<compile_context>
chip_gen: v7x
topology: tpu7x:2x2x1
jax: 0.10.0
libtpu: 0.0.40
codegen_flags: <defaults>
</compile_context>

<pallas_src>
import jax
import jax.numpy as jnp
from jax.experimental import pallas as pl
from jax.experimental.pallas import tpu as pltpu


def onehot_dict_kernel(x_ref, dict_ref, o_ref):
    # x_ref: (TM, V)   dict_ref: (V, E_pad)   o_ref: (TM, E_pad)
    x = x_ref[...]
    tm, v = x.shape

    # First-occurrence argmax over the lane (vocab) axis, matching torch.argmax:
    # max + masked-min of the index iota (two XLU lane reductions).
    iota = jax.lax.broadcasted_iota(jnp.int32, (tm, v), 1)
    max_val = jnp.max(x, axis=-1, keepdims=True)
    first_idx = jnp.min(jnp.where(x == max_val, iota, v), axis=-1, keepdims=True)

    # Exact gather: one-hot (single 1.0 per row) @ dictionary on the MXU.
    # For an f32 table request full f32 contraction precision; the TPU default
    # (bf16 single pass) would round the gathered values.
    onehot = (iota == first_idx).astype(dict_ref.dtype)
    precision = (
        jax.lax.Precision.HIGHEST if dict_ref.dtype == jnp.float32 else None
    )
    o_ref[...] = jnp.dot(
        onehot,
        dict_ref[...],
        preferred_element_type=jnp.float32,
        precision=precision,
    ).astype(o_ref.dtype)


def _round_up(a, b):
    return ((a + b - 1) // b) * b


def _sublane_align(dtype):
    # 8 for f32, 16 for bf16, 32 for int8/fp8 (packed-sublane friendly tiles).
    return max(8, 32 // jnp.dtype(dtype).itemsize)


def _vmem_budget_and_limit():
    """Generation-aware VMEM planning budget and compiler limit (bytes)."""
    try:
        cap = int(pltpu.get_tpu_info().vmem_capacity_bytes)
    except Exception:
        cap = 64 * 1024 * 1024  # conservative fallback, safe on every generation
    return int(cap * 0.75), int(cap * 0.80)


def _pick_tile_m(M, V, E_pad, x_bytes, d_bytes, budget, align, dict_buffers):
    """Largest TM (multiple of `align`) whose working set fits the budget."""
    fixed = dict_buffers * V * E_pad * d_bytes          # resident dictionary
    per_row = (
        2 * V * x_bytes          # x tile, double-buffered input
        + 2 * E_pad * d_bytes    # output tile, double-buffered
        + 3 * V * 4              # iota / compare-mask / where temporaries
        + V * d_bytes            # one-hot in the dictionary dtype
        + E_pad * 4              # f32 matmul result before the output cast
    )
    avail = max(budget - fixed, per_row * align)
    tm = int(avail // per_row) // align * align
    m_cap = _round_up(M, align)
    tm = max(tm, 128)            # MXU-row utilization floor
    tm = min(tm, 4096, m_cap)    # bounded by problem size / pipeline granularity
    return max(tm, align)


def one_hot_dictionary(x, dictionary, *, tile_m=None):
    """x: (B, N, V) float; dictionary: (V, E) float -> (B, N, E)."""
    B, N, V = x.shape
    V2, E = dictionary.shape
    assert V == V2, "vocab size mismatch"

    M = B * N
    x2 = x.reshape(M, V)  # contiguous reshape: no HBM copy

    # Lane-dense output: pad the embedding dim to a multiple of 128 (tiny
    # dictionary-side pad only; x / the output rows are never padded).
    E_pad = _round_up(E, 128)
    dict_p = dictionary if E_pad == E else jnp.pad(
        dictionary, ((0, 0), (0, E_pad - E))
    )

    x_bytes = jnp.dtype(x.dtype).itemsize
    d_bytes = jnp.dtype(dictionary.dtype).itemsize
    align = max(_sublane_align(x.dtype), _sublane_align(dictionary.dtype))

    budget, vmem_limit = _vmem_budget_and_limit()
    tm = tile_m if tile_m is not None else _pick_tile_m(
        M, V, E_pad, x_bytes, d_bytes, budget, align, dict_buffers=1
    )
    tm = max(align, (int(tm) // align) * align)

    grid = (pl.cdiv(M, tm),)  # partial last block; OOB output rows are dropped

    def _call(single_buffer_dict):
        dict_kwargs = (
            {"pipeline_mode": pl.Buffered(1)} if single_buffer_dict else {}
        )
        return pl.pallas_call(
            onehot_dict_kernel,
            out_shape=jax.ShapeDtypeStruct((M, E_pad), dictionary.dtype),
            grid=grid,
            in_specs=[
                pl.BlockSpec((tm, V), lambda i: (i, 0)),                     # x rows
                pl.BlockSpec((V, E_pad), lambda i: (0, 0), **dict_kwargs),   # resident dict
            ],
            out_specs=pl.BlockSpec((tm, E_pad), lambda i: (i, 0)),
            compiler_params=pltpu.CompilerParams(
                dimension_semantics=("parallel",),
                vmem_limit_bytes=vmem_limit,
            ),
        )(x2, dict_p)

    try:
        out = _call(True)
    except Exception:
        # Fallback for jax versions that reject single-buffering via Buffered(1).
        out = _call(False)

    if E_pad != E:
        out = out[:, :E]
    return out.reshape(B, N, E)


if __name__ == "__main__":
    # Small shapes consistent with the module's forward: B, N, vocab_size.
    B, N, VOCAB, EMB = 2, 8, 16, 32

    key = jax.random.PRNGKey(0)
    kx, kw = jax.random.split(key)

    x = jax.random.normal(kx, (B, N, VOCAB), dtype=jnp.float32)
    # nn.Embedding(vocab_size, emb_size) weight ~ N(0, 1)
    dictionary = jax.random.normal(kw, (VOCAB, EMB), dtype=jnp.float32)

    out = jax.block_until_ready(one_hot_dictionary(x, dictionary))

    # Reference check in plain JAX.
    tokens_ref = jnp.argmax(x, axis=-1)
    ref = dictionary[tokens_ref]
    assert out.shape == (B, N, EMB)
    assert jnp.allclose(out, ref, rtol=1e-5, atol=1e-5), (
        "mismatch vs. reference embedding lookup"
    )

    print("KERNEL_OK")
</pallas_src>

<mosaic_0001>
module attributes {stable_mosaic.version = 11 : i64} {
  func.func @onehot_dict_kernel(%arg0: i32, %arg1: memref<16x16xf32, #tpu.memory_space<vmem>>, %arg2: memref<16x128xf32, #tpu.memory_space<vmem>>, %arg3: memref<16x128xf32, #tpu.memory_space<vmem>>) attributes {dimension_semantics = [#tpu.dimension_semantics<parallel>], iteration_bounds = array<i64: 1>, scalar_prefetch = 0 : i64, scratch_operands = 0 : i64, tpu.core_type = #tpu.core_type<tc>, window_params = [{transform_indices = @transform_0, window_bounds = array<i64: 16, 16>}, {pipeline_mode = #tpu.pipeline_mode<synchronous>, transform_indices = @transform_1, window_bounds = array<i64: 16, 128>}, {transform_indices = @transform_2, window_bounds = array<i64: 16, 128>}]} {
    %c0 = arith.constant 0 : index
    %c0_0 = arith.constant 0 : index
    %0 = vector.load %arg1[%c0, %c0_0] : memref<16x16xf32, #tpu.memory_space<vmem>>, vector<16x16xf32>
    %1 = tpu.iota {dimensions = array<i32: 1>} : vector<16x16xi32>
    %cst = arith.constant dense<0xFF800000> : vector<16xf32>
    %2 = vector.multi_reduction <maximumf>, %0, %cst [1] : vector<16x16xf32> to vector<16xf32>
    %3 = vector.shape_cast %2 : vector<16xf32> to vector<16x1xf32>
    %4 = vector.broadcast %3 : vector<16x1xf32> to vector<16x16xf32>
    %5 = arith.cmpf oeq, %0, %4 : vector<16x16xf32>
    %c16_i32 = arith.constant 16 : i32
    %6 = vector.broadcast %c16_i32 : i32 to vector<16x16xi32>
    %7 = arith.select %5, %1, %6 : vector<16x16xi1>, vector<16x16xi32>
    %cst_1 = arith.constant dense<2147483647> : vector<16xi32>
    %8 = vector.multi_reduction <minsi>, %7, %cst_1 [1] : vector<16x16xi32> to vector<16xi32>
    %9 = vector.shape_cast %8 : vector<16xi32> to vector<16x1xi32>
    %10 = vector.broadcast %9 : vector<16x1xi32> to vector<16x16xi32>
    %11 = arith.cmpi eq, %1, %10 : vector<16x16xi32>
    %12 = arith.extui %11 : vector<16x16xi1> to vector<16x16xi32>
    %13 = arith.sitofp %12 : vector<16x16xi32> to vector<16x16xf32>
    %c0_2 = arith.constant 0 : index
    %c0_3 = arith.constant 0 : index
    %14 = vector.load %arg2[%c0_2, %c0_3] : memref<16x128xf32, #tpu.memory_space<vmem>>, vector<16x128xf32>
    %cst_4 = arith.constant dense<0.000000e+00> : vector<16x128xf32>
    %15 = tpu.matmul %13, %14, %cst_4 {dimension_numbers = #tpu.dot_dimension_numbers<[1], [0], [0], [1], [0, 0, 1, 1], [], []>, precision = #tpu.contract_precision<fp32>} : vector<16x16xf32>, vector<16x128xf32>, vector<16x128xf32> -> vector<16x128xf32>
    %c0_5 = arith.constant 0 : index
    %c0_6 = arith.constant 0 : index
    %16 = vector.load %arg3[%c0_5, %c0_6] : memref<16x128xf32, #tpu.memory_space<vmem>>, vector<16x128xf32>
    tpu.vector_store %arg3[%c0_5, %c0_6], %15 {strides = array<i32>} : memref<16x128xf32, #tpu.memory_space<vmem>>, vector<16x128xf32>,
    return
  }
  func.func @transform_0(%arg0: i32) -> (i32, i32) {
    %c0_i32 = arith.constant 0 : i32
    %c0_i32_0 = arith.constant 0 : i32
    return %arg0, %c0_i32 : i32, i32
  }
  func.func @transform_1(%arg0: i32) -> (i32, i32) {
    %c0_i32 = arith.constant 0 : i32
    %c0_i32_0 = arith.constant 0 : i32
    %c0_i32_1 = arith.constant 0 : i32
    return %c0_i32, %c0_i32_0 : i32, i32
  }
  func.func @transform_2(%arg0: i32) -> (i32, i32) {
    %c0_i32 = arith.constant 0 : i32
    %c0_i32_0 = arith.constant 0 : i32
    return %arg0, %c0_i32 : i32, i32
  }
}

module attributes {stable_mosaic.version = 11 : i64} {
  func.func @onehot_dict_kernel(%arg0: i32, %arg1: memref<16x16xf32, #tpu.memory_space<vmem>>, %arg2: memref<16x128xf32, #tpu.memory_space<vmem>>, %arg3: memref<16x128xf32, #tpu.memory_space<vmem>>) attributes {dimension_semantics = [#tpu.dimension_semantics<parallel>], iteration_bounds = array<i64: 1>, scalar_prefetch = 0 : i64, scratch_operands = 0 : i64, tpu.core_type = #tpu.core_type<tc>, window_params = [{transform_indices = @transform_0, window_bounds = array<i64: 16, 16>}, {pipeline_mode = #tpu.pipeline_mode<synchronous>, transform_indices = @transform_1, window_bounds = array<i64: 16, 128>}, {transform_indices = @transform_2, window_bounds = array<i64: 16, 128>}]} {
    %c0 = arith.constant 0 : index
    %c0_0 = arith.constant 0 : index
    %0 = vector.load %arg1[%c0, %c0_0] : memref<16x16xf32, #tpu.memory_space<vmem>>, vector<16x16xf32>
    %1 = tpu.iota {dimensions = array<i32: 1>} : vector<16x16xi32>
    %cst = arith.constant dense<0xFF800000> : vector<16xf32>
    %2 = vector.multi_reduction <maximumf>, %0, %cst [1] : vector<16x16xf32> to vector<16xf32>
    %3 = vector.shape_cast %2 : vector<16xf32> to vector<16x1xf32>
    %4 = vector.broadcast %3 : vector<16x1xf32> to vector<16x16xf32>
    %5 = arith.cmpf oeq, %0, %4 : vector<16x16xf32>
    %c16_i32 = arith.constant 16 : i32
    %6 = vector.broadcast %c16_i32 : i32 to vector<16x16xi32>
    %7 = arith.select %5, %1, %6 : vector<16x16xi1>, vector<16x16xi32>
    %cst_1 = arith.constant dense<2147483647> : vector<16xi32>
    %8 = vector.multi_reduction <minsi>, %7, %cst_1 [1] : vector<16x16xi32> to vector<16xi32>
    %9 = vector.shape_cast %8 : vector<16xi32> to vector<16x1xi32>
    %10 = vector.broadcast %9 : vector<16x1xi32> to vector<16x16xi32>
    %11 = arith.cmpi eq, %1, %10 : vector<16x16xi32>
    %12 = arith.extui %11 : vector<16x16xi1> to vector<16x16xi32>
    %13 = arith.sitofp %12 : vector<16x16xi32> to vector<16x16xf32>
    %c0_2 = arith.constant 0 : index
    %c0_3 = arith.constant 0 : index
    %14 = vector.load %arg2[%c0_2, %c0_3] : memref<16x128xf32, #tpu.memory_space<vmem>>, vector<16x128xf32>
    %cst_4 = arith.constant dense<0.000000e+00> : vector<16x128xf32>
    %15 = tpu.matmul %13, %14, %cst_4 {dimension_numbers = #tpu.dot_dimension_numbers<[1], [0], [0], [1], [0, 0, 1, 1], [], []>, precision = #tpu.contract_precision<fp32>} : vector<16x16xf32>, vector<16x128xf32>, vector<16x128xf32> -> vector<16x128xf32>
    %c0_5 = arith.constant 0 : index
    %c0_6 = arith.constant 0 : index
    %16 = vector.load %arg3[%c0_5, %c0_6] : memref<16x128xf32, #tpu.memory_space<vmem>>, vector<16x128xf32>
    tpu.vector_store %arg3[%c0_5, %c0_6], %15 {strides = array<i32>} : memref<16x128xf32, #tpu.memory_space<vmem>>, vector<16x128xf32>,
    return
  }
  func.func @transform_0(%arg0: i32) -> (i32, i32) {
    %c0_i32 = arith.constant 0 : i32
    %c0_i32_0 = arith.constant 0 : i32
    return %arg0, %c0_i32 : i32, i32
  }
  func.func @transform_1(%arg0: i32) -> (i32, i32) {
    %c0_i32 = arith.constant 0 : i32
    %c0_i32_0 = arith.constant 0 : i32
    %c0_i32_1 = arith.constant 0 : i32
    return %c0_i32, %c0_i32_0 : i32, i32
  }
  func.func @transform_2(%arg0: i32) -> (i32, i32) {
    %c0_i32 = arith.constant 0 : i32
    %c0_i32_0 = arith.constant 0 : i32
    return %arg0, %c0_i32 : i32, i32
  }
}

</mosaic_0001>

<bundles_post_ra>
// kernel: tpu_custom_call.1
= control target key start
LH: loop header
LB: loop body
LE: loop exit
PB: predicated region body
PF: predicated region fallthrough
CT: control target
= control target key end

     0   :  { %7 = vsyncpa [#allocation3], 0  ;;  %s891_s0 = inlined_call_operand.hbm [shape: f32[16,16], index: 0, kind: input, shape index: {}]   ;;  %s892_s1 = inlined_call_operand.hbm [shape: f32[16,128], index: 1, kind: input, shape index: {}]   ;;  %s893_s2 = inlined_call_operand.hbm [shape: f32[16,128], index: 2, kind: output, shape index: {}]  }
   0x1   :  { %8 = vsyncpa [#allocation6], 0 }
   0x2   :  { %9 = vsyncpa [#allocation4], 0  ;;  %s807_s9 = smov [#allocation2]   ;;  %s735_s13 = scalar_lea.hbm %s891_s0, 256 }
   0x3   :  { %s15_s10 = sshll.u32 %s807_s9, 4  ;;  %p736_p0 = scmp.ne.s32.totalorder %s891_s0, %s735_s13  ;;  %s16_s10 = int_to_ptr.vmem [resolvable:$true] %s15_s10 }
   0x4   :  { %p739_p1 = scmp.lt.u32.totalorder %s735_s13, %s891_s0 }
   0x6   :  { %p741_p2 = pnand %p739_p1, %p736_p0 }
   0x8   :  { %744 = shalt.err (!%p741_p2)
}
   0x9   :  { %s745_s18 = scalar_lea.vmem %s16_s10, 256  ;;  %p750_p4 = scmp.lt.s32.totalorder %s16_s10, %s16_s10 }
   0xa   :  { %p746_p3 = scmp.ne.s32.totalorder %s16_s10, %s745_s18  ;;  %p751_p5 = scmp.lt.s32.totalorder %s745_s18, %s745_s18 }
   0xc   :  { %p752_p6 = por %p751_p5, %p750_p4 }
   0xe   :  { %p753_p7 = pnand %p752_p6, %p746_p3 }
  0x10   :  { %756 = shalt.err (!%p753_p7)
}
  0x11   :  { %s808_s19 = smov 128   ;;  %s809_s20 = smov 8  }
  0x12   :  { %21 = dma.hbm_to_vmem [thread:$0]  %s891_s0, 256, %s16_s10, [#allocation3], %s808_s19, %s808_s19, %s809_s20  }
  0x13   :  { %s810_s23 = smov [#allocation5]   ;;  %s757_s27 = scalar_lea.hbm %s892_s1, 256 }
  0x14   :  { %s27_s24 = sshll.u32 %s810_s23, 4  ;;  %p758_p8 = scmp.ne.s32.totalorder %s892_s1, %s757_s27  ;;  %s28_s24 = int_to_ptr.vmem [resolvable:$true] %s27_s24 }
  0x15   :  { %p761_p9 = scmp.lt.u32.totalorder %s757_s27, %s892_s1 }
  0x17   :  { %p763_p10 = pnand %p761_p9, %p758_p8 }
  0x19   :  { %766 = shalt.err (!%p763_p10)
}
  0x1a   :  { %s767_s4 = scalar_lea.vmem %s28_s24, 256  ;;  %p772_p12 = scmp.lt.s32.totalorder %s28_s24, %s28_s24 }
  0x1b   :  { %p768_p11 = scmp.ne.s32.totalorder %s28_s24, %s767_s4  ;;  %p773_p13 = scmp.lt.s32.totalorder %s767_s4, %s767_s4 }
  0x1d   :  { %p774_p0 = por %p773_p13, %p772_p12 }
  0x1f   :  { %p775_p1 = pnand %p774_p0, %p768_p11 }
  0x21   :  { %778 = shalt.err (!%p775_p1)
}
  0x22   :  { %33 = dma.hbm_to_vmem [thread:$0]  %s892_s1, 256, %s28_s24, [#allocation6], %s808_s19, %s808_s19, %s809_s20  }
  0x23   :  { %801 = dma.done.wait [#allocation3], 256  }
  0x24   :  { %802 = vsyncadd [#allocation3], 4294967040 }
  0x25   :  { %803 = dma.done.wait [#allocation6], 256  }
  0x26   :  { %804 = vsyncadd [#allocation6], 4294967040  ;;  %vm44_vm0 = vcmask 130048   ;;  %v40_v0 = vld [vmem:[#allocation2] sm:$0xff]  ;;  %v41_v1 = vld [vmem:[#allocation2 + $0x8] sm:$0xff]  ;;  %v42_v4 = vlaneseq  ;;  %v811_v49 = vmov 0.0  }
  0x27   :  { %v45_v2 = vsel %vm44_vm0, %v40_v0, -inf  ;;  %v48_v3 = vsel %vm44_vm0, %v41_v1, -inf  ;;  %v91_v24 = vld [vmem:[#allocation5] sm:$0xff]  ;;  %v92_v25 = vld [vmem:[#allocation5 + $0x8] sm:$0xff]  ;;  %s812_s1 = smov [#allocation7]  }
  0x28   :  { %46 = vmax.xlane.f32.xlu0 %v45_v2  ;;  %v860_v5 = vand.u32 127, %v42_v4  ;;  %v100_v26 = vand.u32 4294901760, %v91_v24  ;;  %v103_v27 = vand.u32 4294901760, %v92_v25  ;;  %s608_s6 = sshll.u32 %s812_s1, 4  ;;  %s609_s6 = int_to_ptr.vmem [resolvable:$true] %s608_s6 }
  0x29   :  { %s779_s7 = scalar_lea.vmem %s609_s6, 256  ;;  %p784_p3 = scmp.lt.s32.totalorder %s609_s6, %s609_s6 }
  0x2a   :  { %v695_v28 = vpack.c.bf16 %v103_v27, %v100_v26  ;;  %v188_v29 = vsub.f32 %v91_v24, %v100_v26  ;;  %v195_v30 = vsub.f32 %v92_v25, %v103_v27  ;;  %p780_p2 = scmp.ne.s32.totalorder %s609_s6, %s779_s7  ;;  %p785_p4 = scmp.lt.s32.totalorder %s779_s7, %s779_s7 }
  0x2c   :  { %49 = vmax.xlane.f32.xlu0 %v48_v3  ;;  %708 = vmatprep.subr.bf16.mxu0 %v695_v28  ;;  %v189_v31 = vand.u32 4294901760, %v188_v29  ;;  %v196_v32 = vand.u32 4294901760, %v195_v30  ;;  %v703_v39 = vpack.c.bf16 %v195_v30, %v188_v29  ;;  %p786_p5 = por %p785_p4, %p784_p3 }
  0x2d   :  { %696 = vmatprep.subr.bf16.mxu1 %v695_v28  ;;  %710 = vmatpush3.bf16.msra.mxu0 %v695_v28 }
  0x2e   :  { %698 = vmatpush3.bf16.msra.mxu1 %v695_v28  ;;  %v190_v33 = vsub.f32 %v188_v29, %v189_v31  ;;  %v197_v34 = vsub.f32 %v195_v30, %v196_v32  ;;  %v711_v35 = vpack.c.bf16 %v196_v32, %v189_v31  ;;  %p787_p6 = pnand %p786_p5, %p780_p2 }
  0x30   :  { %v191_v36 = vand.u32 4294901760, %v190_v33  ;;  %v198_v37 = vand.u32 4294901760, %v197_v34  ;;  %712 = vmatprep.subr.bf16.mxu0 %v711_v35 }
  0x32   :  { %v699_v38 = vpack.c.bf16 %v198_v37, %v191_v36 }
  0x34   :  { %700 = vmatprep.subr.bf16.mxu1 %v699_v38 }
  0xb5   :  { %v47_v6 = vpop.xlane.xlu0 %46 }
  0xb6   :  { %vm51_vm1 = vcmp.eq.f32.partialorder %v40_v0, %v47_v6 }
  0xb7   :  { %v53_v7 = vsel %vm51_vm1, %v860_v5, 16 }
  0xb8   :  { %v55_v8 = vsel %vm44_vm0, %v53_v7, 2147483647 }
  0xb9   :  { %v50_v9 = vpop.xlane.xlu0 %49  ;;  %v57_v10 = vshra.s32 %v55_v8, 16  ;;  %v56_v16 = vand.u32 65535, %v55_v8 }
  0xba   :  { %vm52_vm2 = vcmp.eq.f32.partialorder %v41_v1, %v50_v9 }
  0xbb   :  { %v54_v11 = vsel %vm52_vm2, %v860_v5, 16  ;;  %v59_v12 = vcvt.s32.f32 %v57_v10  ;;  %v58_v18 = vcvt.s32.f32 %v56_v16 }
  0xbc   :  { %v70_v13 = vsel %vm44_vm0, %v54_v11, 2147483647 }
  0xbd   :  { %60 = vmin.xlane.f32.xlu1 %v59_v12  ;;  %v72_v14 = vshra.s32 %v70_v13, 16  ;;  %v71_v19 = vand.u32 65535, %v70_v13 }
  0xbf   :  { %v74_v15 = vcvt.s32.f32 %v72_v14  ;;  %v73_v22 = vcvt.s32.f32 %v71_v19 }
  0xc1   :  { %75 = vmin.xlane.f32.xlu1 %v74_v15 }
 0x14a   :  { %v61_v17 = vpop.xlane.xlu1 %60 }
 0x14b   :  { %vm62_vm3 = vcmp.eq.f32.partialorder %v59_v12, %v61_v17  ;;  %v67_v40 = vcvt.f32.s32 %v61_v17 }
 0x14c   :  { %v63_v20 = vsel %vm62_vm3, %v58_v18, inf }
 0x14d   :  { %64 = vmin.xlane.f32.xlu0 %v63_v20  ;;  %v68_v42 = vshll.u32 %v67_v40, 16 }
 0x14e   :  { %v76_v21 = vpop.xlane.xlu1 %75 }
 0x14f   :  { %vm77_vm4 = vcmp.eq.f32.partialorder %v74_v15, %v76_v21  ;;  %v82_v43 = vcvt.f32.s32 %v76_v21 }
 0x150   :  { %v78_v23 = vsel %vm77_vm4, %v73_v22, inf }
 0x151   :  { %79 = vmin.xlane.f32.xlu1 %v78_v23  ;;  %v83_v47 = vshll.u32 %v82_v43, 16 }
 0x1da   :  { %v65_v41 = vpop.xlane.xlu0 %64 }
 0x1db   :  { %v66_v44 = vcvt.f32.s32 %v65_v41 }
 0x1dd   :  { %v69_v45 = vadd.s32 %v68_v42, %v66_v44 }
 0x1de   :  { %v80_v46 = vpop.xlane.xlu1 %79 }
 0x1df   :  { %vm85_vm5 = vcmp.eq.s32.totalorder %v860_v5, %v69_v45  ;;  %v81_v48 = vcvt.f32.s32 %v80_v46 }
 0x1e0   :  { %v621_v50 = vsel %vm85_vm5, 1.0, %v811_v49 }
 0x1e1   :  { %v84_v51 = vadd.s32 %v83_v47, %v81_v48  ;;  %v94_v52 = vsel %vm44_vm0, %v621_v50, 0 }
 0x1e2   :  { %v167_v53 = vsub.f32 %v94_v52, %v94_v52 }
 0x1e3   :  { %vm86_vm6 = vcmp.eq.s32.totalorder %v860_v5, %v84_v51 }
 0x1e4   :  { %v622_v54 = vsel %vm86_vm6, 1.0, %v811_v49  ;;  %v168_v55 = vand.u32 4294901760, %v167_v53 }
 0x1e5   :  { %v97_v56 = vsel %vm44_vm0, %v622_v54, 0 }
 0x1e6   :  { %678 = vmatprep.mubr.f32.mxu0 %v168_v55  ;;  %v169_v57 = vsub.f32 %v167_v53, %v168_v55  ;;  %v177_v58 = vsub.f32 %v97_v56, %v97_v56 }
 0x1e8   :  { %v170_v59 = vand.u32 4294901760, %v169_v57  ;;  %v178_v60 = vand.u32 4294901760, %v177_v58 }
 0x1ea   :  { %657 = vmatprep.mubr.f32.mxu1 %v170_v59  ;;  %679 = vmatmul.mubr.f32.vlgmr.msra.gmra.mrb[0].mxu0 %v178_v60  ;;  %v179_v61 = vsub.f32 %v177_v58, %v178_v60 }
 0x1eb   :  { %685 = vmatprep.mubr.msk.f32.mxu0 %vm44_vm0, %v621_v50  ;;  %714 = vmatpush3.bf16.msra.mxu0 %v711_v35 }
 0x1ec   :  { %v180_v62 = vand.u32 4294901760, %v179_v61  ;;  %716 = vmatprep.subr.bf16.mxu0 %v695_v28 }
 0x1ee   :  { %658 = vmatmul.mubr.f32.vlgmr.msra.gmra.mrb[0].mxu1 %v180_v62 }
 0x1ef   :  { %702 = vmatpush3.bf16.msra.mxu1 %v699_v38  ;;  %664 = vmatprep.mubr.msk.f32.mxu1 %vm44_vm0, %v621_v50 }
 0x1f0   :  { %704 = vmatprep.subr.bf16.mxu1 %v703_v39 }
 0x1f2   :  { %686 = vmatmul.mubr.msk.f32.vlgmr.msra.gmra.mrb[0].mxu0 %vm44_vm0, %v622_v54 }
 0x1f3   :  { %692 = vmatprep.mubr.msk.f32.mxu0 %vm44_vm0, %v621_v50  ;;  %718 = vmatpush3.bf16.msra.mxu0 %v695_v28 }
 0x1f6   :  { %665 = vmatmul.mubr.msk.f32.vlgmr.msra.gmra.mrb[0].mxu1 %vm44_vm0, %v622_v54 }
 0x1f7   :  { %706 = vmatpush3.bf16.msra.mxu1 %v703_v39  ;;  %671 = vmatprep.mubr.f32.mxu1 %v167_v53 }
 0x1fa   :  { %693 = vmatmul.mubr.msk.f32.vlgmr.msra.gmra.mrb[0].mxu0 %vm44_vm0, %v622_v54 }
 0x1fe   :  { %672 = vmatmul.mubr.f32.vlgmr.msra.gmra.mrb[0].mxu1 %v177_v58 }
 0x2cd   :  { %v694_v63 = vpop.f32.mrb[0].mxu0 }
 0x2ce   :  { %v591_v0 = vpop.f32.mrb[1].mxu0 }
 0x2d1   :  { %v673_v1 = vpop.f32.mrb[0].mxu1 }
 0x2d2   :  { %v719_v2 = vadd.f32 %v694_v63, %v673_v1  ;;  %v345_v3 = vpop.f32.mrb[1].mxu1 }
 0x2d3   :  { %v720_v4 = vadd.f32 %v591_v0, %v345_v3 }
 0x2d4   :  { %602 = vst [vmem:[#allocation7 + $0x8] sm:$0xff] %v719_v2 }
 0x2d5   :  { %601 = vst [vmem:[#allocation7] sm:$0xff] %v720_v4 }
 0x2d6   :  { %790 = shalt.err (!%p787_p6)
}
 0x2d7   :  { %s791_s10 = scalar_lea.hbm %s893_s2, 256 }
 0x2d8   :  { %p792_p7 = scmp.ne.s32.totalorder %s893_s2, %s791_s10  ;;  %p795_p8 = scmp.lt.u32.totalorder %s791_s10, %s893_s2 }
 0x2da   :  { %p797_p9 = pnand %p795_p8, %p792_p7 }
 0x2dc   :  { %800 = shalt.err (!%p797_p9)
}
 0x2dd   :  { %614 = dma.vmem_to_hbm [thread:$0]  %s609_s6, 256, %s893_s2, [#allocation4], %s808_s19, %s808_s19, %s809_s20  }
 0x2de   :  { %805 = dma.done.wait [#allocation4], 256  }
 0x2df   :  { %806 = vsyncadd [#allocation4], 4294967040 }
 0x2e0   :  { %618 = vsyncpa [#allocation3], 1 }
 0x2e1   :  { %619 = vsyncpa [#allocation6], 1 }
 0x2e2   :  { %620 = vsyncpa [#allocation4], 1 }

// kernel: tpu_custom_call.1
= control target key start
LH: loop header
LB: loop body
LE: loop exit
PB: predicated region body
PF: predicated region fallthrough
CT: control target
= control target key end

     0   :  { %7 = vsyncpa [#allocation3], 0  ;;  %s891_s0 = inlined_call_operand.hbm [shape: f32[16,16], index: 0, kind: input, shape index: {}]   ;;  %s892_s1 = inlined_call_operand.hbm [shape: f32[16,128], index: 1, kind: input, shape index: {}]   ;;  %s893_s2 = inlined_call_operand.hbm [shape: f32[16,128], index: 2, kind: output, shape index: {}]  }
   0x1   :  { %8 = vsyncpa [#allocation6], 0 }
   0x2   :  { %9 = vsyncpa [#allocation4], 0  ;;  %s807_s9 = smov [#allocation2]   ;;  %s735_s13 = scalar_lea.hbm %s891_s0, 256 }
   0x3   :  { %s15_s10 = sshll.u32 %s807_s9, 4  ;;  %p736_p0 = scmp.ne.s32.totalorder %s891_s0, %s735_s13  ;;  %s16_s10 = int_to_ptr.vmem [resolvable:$true] %s15_s10 }
   0x4   :  { %p739_p1 = scmp.lt.u32.totalorder %s735_s13, %s891_s0 }
   0x6   :  { %p741_p2 = pnand %p739_p1, %p736_p0 }
   0x8   :  { %744 = shalt.err (!%p741_p2)
}
   0x9   :  { %s745_s18 = scalar_lea.vmem %s16_s10, 256  ;;  %p750_p4 = scmp.lt.s32.totalorder %s16_s10, %s16_s10 }
   0xa   :  { %p746_p3 = scmp.ne.s32.totalorder %s16_s10, %s745_s18  ;;  %p751_p5 = scmp.lt.s32.totalorder %s745_s18, %s745_s18 }
   0xc   :  { %p752_p6 = por %p751_p5, %p750_p4 }
   0xe   :  { %p753_p7 = pnand %p752_p6, %p746_p3 }
  0x10   :  { %756 = shalt.err (!%p753_p7)
}
  0x11   :  { %s808_s19 = smov 128   ;;  %s809_s20 = smov 8  }
  0x12   :  { %21 = dma.hbm_to_vmem [thread:$0]  %s891_s0, 256, %s16_s10, [#allocation3], %s808_s19, %s808_s19, %s809_s20  }
  0x13   :  { %s810_s23 = smov [#allocation5]   ;;  %s757_s27 = scalar_lea.hbm %s892_s1, 256 }
  0x14   :  { %s27_s24 = sshll.u32 %s810_s23, 4  ;;  %p758_p8 = scmp.ne.s32.totalorder %s892_s1, %s757_s27  ;;  %s28_s24 = int_to_ptr.vmem [resolvable:$true] %s27_s24 }
  0x15   :  { %p761_p9 = scmp.lt.u32.totalorder %s757_s27, %s892_s1 }
  0x17   :  { %p763_p10 = pnand %p761_p9, %p758_p8 }
  0x19   :  { %766 = shalt.err (!%p763_p10)
}
  0x1a   :  { %s767_s4 = scalar_lea.vmem %s28_s24, 256  ;;  %p772_p12 = scmp.lt.s32.totalorder %s28_s24, %s28_s24 }
  0x1b   :  { %p768_p11 = scmp.ne.s32.totalorder %s28_s24, %s767_s4  ;;  %p773_p13 = scmp.lt.s32.totalorder %s767_s4, %s767_s4 }
  0x1d   :  { %p774_p0 = por %p773_p13, %p772_p12 }
  0x1f   :  { %p775_p1 = pnand %p774_p0, %p768_p11 }
  0x21   :  { %778 = shalt.err (!%p775_p1)
}
  0x22   :  { %33 = dma.hbm_to_vmem [thread:$0]  %s892_s1, 256, %s28_s24, [#allocation6], %s808_s19, %s808_s19, %s809_s20  }
  0x23   :  { %801 = dma.done.wait [#allocation3], 256  }
  0x24   :  { %802 = vsyncadd [#allocation3], 4294967040 }
  0x25   :  { %803 = dma.done.wait [#allocation6], 256  }
  0x26   :  { %804 = vsyncadd [#allocation6], 4294967040  ;;  %vm44_vm0 = vcmask 130048   ;;  %v40_v0 = vld [vmem:[#allocation2] sm:$0xff]  ;;  %v41_v1 = vld [vmem:[#allocation2 + $0x8] sm:$0xff]  ;;  %v42_v4 = vlaneseq  ;;  %v811_v49 = vmov 0.0  }
  0x27   :  { %v45_v2 = vsel %vm44_vm0, %v40_v0, -inf  ;;  %v48_v3 = vsel %vm44_vm0, %v41_v1, -inf  ;;  %v91_v24 = vld [vmem:[#allocation5] sm:$0xff]  ;;  %v92_v25 = vld [vmem:[#allocation5 + $0x8] sm:$0xff]  ;;  %s812_s1 = smov [#allocation7]  }
  0x28   :  { %46 = vmax.xlane.f32.xlu0 %v45_v2  ;;  %v860_v5 = vand.u32 127, %v42_v4  ;;  %v100_v26 = vand.u32 4294901760, %v91_v24  ;;  %v103_v27 = vand.u32 4294901760, %v92_v25  ;;  %s608_s6 = sshll.u32 %s812_s1, 4  ;;  %s609_s6 = int_to_ptr.vmem [resolvable:$true] %s608_s6 }
  0x29   :  { %s779_s7 = scalar_lea.vmem %s609_s6, 256  ;;  %p784_p3 = scmp.lt.s32.totalorder %s609_s6, %s609_s6 }
  0x2a   :  { %v695_v28 = vpack.c.bf16 %v103_v27, %v100_v26  ;;  %v188_v29 = vsub.f32 %v91_v24, %v100_v26  ;;  %v195_v30 = vsub.f32 %v92_v25, %v103_v27  ;;  %p780_p2 = scmp.ne.s32.totalorder %s609_s6, %s779_s7  ;;  %p785_p4 = scmp.lt.s32.totalorder %s779_s7, %s779_s7 }
  0x2c   :  { %49 = vmax.xlane.f32.xlu0 %v48_v3  ;;  %708 = vmatprep.subr.bf16.mxu0 %v695_v28  ;;  %v189_v31 = vand.u32 4294901760, %v188_v29  ;;  %v196_v32 = vand.u32 4294901760, %v195_v30  ;;  %v703_v39 = vpack.c.bf16 %v195_v30, %v188_v29  ;;  %p786_p5 = por %p785_p4, %p784_p3 }
  0x2d   :  { %696 = vmatprep.subr.bf16.mxu1 %v695_v28  ;;  %710 = vmatpush3.bf16.msra.mxu0 %v695_v28 }
  0x2e   :  { %698 = vmatpush3.bf16.msra.mxu1 %v695_v28  ;;  %v190_v33 = vsub.f32 %v188_v29, %v189_v31  ;;  %v197_v34 = vsub.f32 %v195_v30, %v196_v32  ;;  %v711_v35 = vpack.c.bf16 %v196_v32, %v189_v31  ;;  %p787_p6 = pnand %p786_p5, %p780_p2 }
  0x30   :  { %v191_v36 = vand.u32 4294901760, %v190_v33  ;;  %v198_v37 = vand.u32 4294901760, %v197_v34  ;;  %712 = vmatprep.subr.bf16.mxu0 %v711_v35 }
  0x32   :  { %v699_v38 = vpack.c.bf16 %v198_v37, %v191_v36 }
  0x34   :  { %700 = vmatprep.subr.bf16.mxu1 %v699_v38 }
  0xb5   :  { %v47_v6 = vpop.xlane.xlu0 %46 }
  0xb6   :  { %vm51_vm1 = vcmp.eq.f32.partialorder %v40_v0, %v47_v6 }
  0xb7   :  { %v53_v7 = vsel %vm51_vm1, %v860_v5, 16 }
  0xb8   :  { %v55_v8 = vsel %vm44_vm0, %v53_v7, 2147483647 }
  0xb9   :  { %v50_v9 = vpop.xlane.xlu0 %49  ;;  %v57_v10 = vshra.s32 %v55_v8, 16  ;;  %v56_v16 = vand.u32 65535, %v55_v8 }
  0xba   :  { %vm52_vm2 = vcmp.eq.f32.partialorder %v41_v1, %v50_v9 }
  0xbb   :  { %v54_v11 = vsel %vm52_vm2, %v860_v5, 16  ;;  %v59_v12 = vcvt.s32.f32 %v57_v10  ;;  %v58_v18 = vcvt.s32.f32 %v56_v16 }
  0xbc   :  { %v70_v13 = vsel %vm44_vm0, %v54_v11, 2147483647 }
  0xbd   :  { %60 = vmin.xlane.f32.xlu1 %v59_v12  ;;  %v72_v14 = vshra.s32 %v70_v13, 16  ;;  %v71_v19 = vand.u32 65535, %v70_v13 }
  0xbf   :  { %v74_v15 = vcvt.s32.f32 %v72_v14  ;;  %v73_v22 = vcvt.s32.f32 %v71_v19 }
  0xc1   :  { %75 = vmin.xlane.f32.xlu1 %v74_v15 }
 0x14a   :  { %v61_v17 = vpop.xlane.xlu1 %60 }
 0x14b   :  { %vm62_vm3 = vcmp.eq.f32.partialorder %v59_v12, %v61_v17  ;;  %v67_v40 = vcvt.f32.s32 %v61_v17 }
 0x14c   :  { %v63_v20 = vsel %vm62_vm3, %v58_v18, inf }
 0x14d   :  { %64 = vmin.xlane.f32.xlu0 %v63_v20  ;;  %v68_v42 = vshll.u32 %v67_v40, 16 }
 0x14e   :  { %v76_v21 = vpop.xlane.xlu1 %75 }
 0x14f   :  { %vm77_vm4 = vcmp.eq.f32.partialorder %v74_v15, %v76_v21  ;;  %v82_v43 = vcvt.f32.s32 %v76_v21 }
 0x150   :  { %v78_v23 = vsel %vm77_vm4, %v73_v22, inf }
 0x151   :  { %79 = vmin.xlane.f32.xlu1 %v78_v23  ;;  %v83_v47 = vshll.u32 %v82_v43, 16 }
 0x1da   :  { %v65_v41 = vpop.xlane.xlu0 %64 }
 0x1db   :  { %v66_v44 = vcvt.f32.s32 %v65_v41 }
 0x1dd   :  { %v69_v45 = vadd.s32 %v68_v42, %v66_v44 }
 0x1de   :  { %v80_v46 = vpop.xlane.xlu1 %79 }
 0x1df   :  { %vm85_vm5 = vcmp.eq.s32.totalorder %v860_v5, %v69_v45  ;;  %v81_v48 = vcvt.f32.s32 %v80_v46 }
 0x1e0   :  { %v621_v50 = vsel %vm85_vm5, 1.0, %v811_v49 }
 0x1e1   :  { %v84_v51 = vadd.s32 %v83_v47, %v81_v48  ;;  %v94_v52 = vsel %vm44_vm0, %v621_v50, 0 }
 0x1e2   :  { %v167_v53 = vsub.f32 %v94_v52, %v94_v52 }
 0x1e3   :  { %vm86_vm6 = vcmp.eq.s32.totalorder %v860_v5, %v84_v51 }
 0x1e4   :  { %v622_v54 = vsel %vm86_vm6, 1.0, %v811_v49  ;;  %v168_v55 = vand.u32 4294901760, %v167_v53 }
 0x1e5   :  { %v97_v56 = vsel %vm44_vm0, %v622_v54, 0 }
 0x1e6   :  { %678 = vmatprep.mubr.f32.mxu0 %v168_v55  ;;  %v169_v57 = vsub.f32 %v167_v53, %v168_v55  ;;  %v177_v58 = vsub.f32 %v97_v56, %v97_v56 }
 0x1e8   :  { %v170_v59 = vand.u32 4294901760, %v169_v57  ;;  %v178_v60 = vand.u32 4294901760, %v177_v58 }
 0x1ea   :  { %657 = vmatprep.mubr.f32.mxu1 %v170_v59  ;;  %679 = vmatmul.mubr.f32.vlgmr.msra.gmra.mrb[0].mxu0 %v178_v60  ;;  %v179_v61 = vsub.f32 %v177_v58, %v178_v60 }
 0x1eb   :  { %685 = vmatprep.mubr.msk.f32.mxu0 %vm44_vm0, %v621_v50  ;;  %714 = vmatpush3.bf16.msra.mxu0 %v711_v35 }
 0x1ec   :  { %v180_v62 = vand.u32 4294901760, %v179_v61  ;;  %716 = vmatprep.subr.bf16.mxu0 %v695_v28 }
 0x1ee   :  { %658 = vmatmul.mubr.f32.vlgmr.msra.gmra.mrb[0].mxu1 %v180_v62 }
 0x1ef   :  { %702 = vmatpush3.bf16.msra.mxu1 %v699_v38  ;;  %664 = vmatprep.mubr.msk.f32.mxu1 %vm44_vm0, %v621_v50 }
 0x1f0   :  { %704 = vmatprep.subr.bf16.mxu1 %v703_v39 }
 0x1f2   :  { %686 = vmatmul.mubr.msk.f32.vlgmr.msra.gmra.mrb[0].mxu0 %vm44_vm0, %v622_v54 }
 0x1f3   :  { %692 = vmatprep.mubr.msk.f32.mxu0 %vm44_vm0, %v621_v50  ;;  %718 = vmatpush3.bf16.msra.mxu0 %v695_v28 }
 0x1f6   :  { %665 = vmatmul.mubr.msk.f32.vlgmr.msra.gmra.mrb[0].mxu1 %vm44_vm0, %v622_v54 }
 0x1f7   :  { %706 = vmatpush3.bf16.msra.mxu1 %v703_v39  ;;  %671 = vmatprep.mubr.f32.mxu1 %v167_v53 }
 0x1fa   :  { %693 = vmatmul.mubr.msk.f32.vlgmr.msra.gmra.mrb[0].mxu0 %vm44_vm0, %v622_v54 }
 0x1fe   :  { %672 = vmatmul.mubr.f32.vlgmr.msra.gmra.mrb[0].mxu1 %v177_v58 }
 0x2cd   :  { %v694_v63 = vpop.f32.mrb[0].mxu0 }
 0x2ce   :  { %v591_v0 = vpop.f32.mrb[1].mxu0 }
 0x2d1   :  { %v673_v1 = vpop.f32.mrb[0].mxu1 }
 0x2d2   :  { %v719_v2 = vadd.f32 %v694_v63, %v673_v1  ;;  %v345_v3 = vpop.f32.mrb[1].mxu1 }
 0x2d3   :  { %v720_v4 = vadd.f32 %v591_v0, %v345_v3 }
 0x2d4   :  { %602 = vst [vmem:[#allocation7 + $0x8] sm:$0xff] %v719_v2 }
 0x2d5   :  { %601 = vst [vmem:[#allocation7] sm:$0xff] %v720_v4 }
 0x2d6   :  { %790 = shalt.err (!%p787_p6)
}
 0x2d7   :  { %s791_s10 = scalar_lea.hbm %s893_s2, 256 }
 0x2d8   :  { %p792_p7 = scmp.ne.s32.totalorder %s893_s2, %s791_s10  ;;  %p795_p8 = scmp.lt.u32.totalorder %s791_s10, %s893_s2 }
 0x2da   :  { %p797_p9 = pnand %p795_p8, %p792_p7 }
 0x2dc   :  { %800 = shalt.err (!%p797_p9)
}
 0x2dd   :  { %614 = dma.vmem_to_hbm [thread:$0]  %s609_s6, 256, %s893_s2, [#allocation4], %s808_s19, %s808_s19, %s809_s20  }
 0x2de   :  { %805 = dma.done.wait [#allocation4], 256  }
 0x2df   :  { %806 = vsyncadd [#allocation4], 4294967040 }
 0x2e0   :  { %618 = vsyncpa [#allocation3], 1 }
 0x2e1   :  { %619 = vsyncpa [#allocation6], 1 }
 0x2e2   :  { %620 = vsyncpa [#allocation4], 1 }

</bundles_post_ra>
